<compile_context>
chip_gen: v5e
topology: v5e:2x2
jax: 0.10.0
libtpu: 0.0.40
codegen_flags: <defaults>
</compile_context>

<pallas_src>
import functools
import math

import jax
import jax.numpy as jnp
from jax.experimental import pallas as pl
from jax.experimental.pallas import tpu as pltpu


def _dual_task_partials_kernel(logits_ref, gum_ref, gts_ref, out_ref, *,
                               ignore_pixel, inv_tau, hw, tm, need_tail_mask):
    t = pl.program_id(1)
    num_t = pl.num_programs(1)
    C, TM = logits_ref.shape

    logits = logits_ref[...].astype(jnp.float32)        # (C, TM)
    gum = gum_ref[...]                                   # (C, TM) f32
    gts = gts_ref[...].astype(jnp.int32)                 # (1, TM)

    # --- ignore-pixel masking --------------------------------------------
    ignore = gts == ignore_pixel                         # (1, TM) bool
    logits = jnp.where(jnp.broadcast_to(ignore, (C, TM)),
                       jnp.float32(0.0), logits)
    labels = jnp.where(ignore, jnp.int32(0), gts)        # (1, TM)

    # --- Gumbel-softmax over the channel (sublane) axis, /tau folded in ----
    y = (logits + gum) * inv_tau
    y_max = jnp.max(y, axis=0, keepdims=True)
    e = jnp.exp(y - y_max)
    denom = jnp.sum(e, axis=0, keepdims=True)
    g = e / denom      # exact divide => g <= 1 and g <= global max(g),
                       # which makes the |.| sign-split in the wrapper exact.

    # Un-normalised gradient magnitude of g (convTri == identity, central
    # diff returns (g, g)): sqrt(2 g^2 + 1e-6).
    raw = jnp.sqrt(2.0 * g * g + jnp.float32(1e-6))

    class_ids = jax.lax.broadcasted_iota(jnp.int32, (C, TM), 0)
    one_hot = class_ids == jnp.broadcast_to(labels, (C, TM))

    def _reduce_and_store(valid):
        if valid is None:
            gv = g
            raw_on = jnp.where(one_hot, raw, jnp.float32(0.0))
            raw_all = raw
        else:
            gv = jnp.where(valid, g, jnp.float32(0.0))
            raw_on = jnp.where(jnp.logical_and(one_hot, valid), raw,
                               jnp.float32(0.0))
            raw_all = jnp.where(valid, raw, jnp.float32(0.0))
        tile_max = jnp.max(jnp.max(gv, axis=1, keepdims=True),
                           axis=0, keepdims=True)                  # (1, 1)
        s_on = jnp.sum(jnp.sum(raw_on, axis=1, keepdims=True),
                       axis=0, keepdims=True)                      # (1, 1)
        s_all = jnp.sum(jnp.sum(raw_all, axis=1, keepdims=True),
                        axis=0, keepdims=True)                     # (1, 1)
        # Lane-dense (8,128) partial block: row0=max(g), row1=S_on, row2=S_all.
        rows = jax.lax.broadcasted_iota(jnp.int32, (8, 128), 0)
        vals = jnp.where(rows == 0, tile_max,
               jnp.where(rows == 1, s_on,
               jnp.where(rows == 2, s_all, jnp.float32(0.0))))
        out_ref[0, 0] = vals

    if need_tail_mask:
        # Only the last spatial tile pays the validity mask.
        @pl.when(t != num_t - 1)
        def _full_tile():
            _reduce_and_store(None)

        @pl.when(t == num_t - 1)
        def _tail_tile():
            lane = jax.lax.broadcasted_iota(jnp.int32, (C, TM), 1)
            valid = (t * tm + lane) < hw
            _reduce_and_store(valid)
    else:
        _reduce_and_store(None)


def _chip_budgets():
    """Returns (per-step VMEM working-set budget, vmem_limit_bytes)."""
    vmem_phys = 128 * 1024 * 1024
    try:
        if jax.devices()[0].platform == "tpu":
            vmem_phys = int(pltpu.get_tpu_info().vmem_capacity_bytes)
    except Exception:
        pass
    if vmem_phys <= 64 * 1024 * 1024:                  # v7x-class TensorCore
        return 12 * 1024 * 1024, 48 * 1024 * 1024
    return 22 * 1024 * 1024, 96 * 1024 * 1024          # v5e / v6e (128 MiB)


def dual_task_loss(input_logits, gts, key, ignore_pixel=255,
                   tau=0.5, th=1e-8, eps=1e-10, tm=None):
    """input_logits: (N, C, H, W) float; gts: (N, 1, H, W) integer labels."""
    N, C, H, W = input_logits.shape
    HW = H * W

    # Static guard: normalised magnitudes are >= sqrt(1e-6)/sqrt(2+1e-6), so
    # for the module's th = 1e-8 both masked means are exact plain means.
    c_off = math.sqrt(1e-6) / math.sqrt(2.0 + 1e-6)
    if not th < 0.5 * c_off:
        # TODO(synk): add an in-kernel masked-reduction path for large `th`.
        raise NotImplementedError(
            "kernel assumes th << %.3g (module uses th=1e-8)" % c_off)

    # --- inputs: free reshapes, no wrapper dtype copies --------------------
    if input_logits.dtype not in (jnp.float32, jnp.bfloat16):
        input_logits = input_logits.astype(jnp.float32)
    logits_r = input_logits.reshape(N, C, HW)

    gts_r = gts.reshape(N, 1, HW)
    if gts_r.dtype not in (jnp.int32, jnp.int8, jnp.uint8):
        gts_r = gts_r.astype(jnp.int32)

    # Gumbel noise (reference: U~[0,1) -> -log(eps - log(U+eps))), generated
    # as one fused XLA op and streamed next to the logits.
    u = jax.random.uniform(key, (N, C, HW), dtype=jnp.float32)
    gum_r = -jnp.log(eps - jnp.log(u + eps))

    # --- chip-aware tile sizing --------------------------------------------
    ws_budget, vmem_limit = _chip_budgets()
    lb = jnp.dtype(logits_r.dtype).itemsize
    gb = jnp.dtype(gts_r.dtype).itemsize
    # 2x double-buffered logits + 2x gumbel + ~8 live (C, TM) f32 temporaries.
    per_col = C * (2 * lb + 2 * 4 + 8 * 4) + 2 * gb
    tm_auto = max(128, ((ws_budget // per_col) // 128) * 128)
    tm_target = tm if tm is not None else tm_auto
    if HW <= tm_target:
        tm_eff = HW
    else:
        tm_eff = max(128, (tm_target // 128) * 128)
    num_tiles = pl.cdiv(HW, tm_eff)
    need_tail_mask = (HW % tm_eff) != 0

    kernel = functools.partial(
        _dual_task_partials_kernel,
        ignore_pixel=ignore_pixel, inv_tau=1.0 / tau,
        hw=HW, tm=tm_eff, need_tail_mask=need_tail_mask)

    elems = N * C * HW
    cost = pl.CostEstimate(
        flops=int(25 * elems),
        transcendentals=int(2 * elems),              # exp + sqrt per element
        bytes_accessed=int(logits_r.size * lb + gum_r.size * 4
                           + gts_r.size * gb + N * num_tiles * 8 * 128 * 4))

    partials = pl.pallas_call(
        kernel,
        out_shape=jax.ShapeDtypeStruct((N, num_tiles, 8, 128), jnp.float32),
        grid_spec=pltpu.PrefetchScalarGridSpec(
            num_scalar_prefetch=0,
            grid=(N, num_tiles),
            in_specs=[
                pl.BlockSpec((None, C, tm_eff), lambda n, t: (n, 0, t)),
                pl.BlockSpec((None, C, tm_eff), lambda n, t: (n, 0, t)),
                pl.BlockSpec((None, 1, tm_eff), lambda n, t: (n, 0, t)),
            ],
            out_specs=pl.BlockSpec((1, 1, 8, 128), lambda n, t: (n, t, 0, 0)),
        ),
        compiler_params=pltpu.CompilerParams(
            # Per-(batch, tile) partials are independent: both axes parallel,
            # so v7x's two TensorCores split the streaming work.
            dimension_semantics=("parallel", "parallel"),
            vmem_limit_bytes=vmem_limit),
        cost_estimate=cost,
    )(logits_r, gum_r, gts_r)

    # --- tiny cross-tile reduce + closed-form sum|mag_g - mag_gh| ----------
    gm = jnp.max(partials[:, :, 0, 0])               # global max(g), <= 1
    s_on = jnp.sum(partials[:, :, 1, 0])             # sum raw mag at GT class
    s_all = jnp.sum(partials[:, :, 2, 0])
    s_off = s_all - s_on
    inv_norm = 1.0 / jnp.sqrt(2.0 * gm * gm + 1e-6)  # 1 / max(mag_g)

    n_on = float(N * HW)                             # one GT class per pixel
    n_off = float((C - 1) * N * HW)
    # on-class:  |mag_g - 1|     = 1 - mag_g      (mag_g <= 1)
    # off-class: |mag_g - c_off| = mag_g - c_off  (mag_g >= c_off)
    l1_sum = n_on - c_off * n_off + inv_norm * (s_off - s_on)

    # Both >=th masks are all-ones, so 0.5*S/D + 0.5*S/D = S/D,
    # D = N*C*H*W + eps.
    return l1_sum / (float(N * C * HW) + eps)


if __name__ == "__main__":
    N, C, H, W = 2, 4, 16, 16
    key = jax.random.PRNGKey(0)
    k_logits, k_gts, k_noise = jax.random.split(key, 3)

    input_logits = jax.random.normal(k_logits, (N, C, H, W), dtype=jnp.float32)
    gts = jax.random.randint(k_gts, (N, 1, H, W), 0, C, dtype=jnp.int32)
    # Sprinkle some ignore pixels to exercise the masking path.
    gts = gts.at[0, 0, :2, :].set(255)

    loss = jax.jit(dual_task_loss)(input_logits, gts, k_noise)
    jax.block_until_ready(loss)
    print("KERNEL_OK")
</pallas_src>

<mosaic_0001>
module attributes {stable_mosaic.version = 11 : i64} {
  func.func @_dual_task_partials_kernel(%arg0: i32, %arg1: i32, %arg2: memref<1x4x256xf32, #tpu.memory_space<vmem>>, %arg3: memref<1x4x256xf32, #tpu.memory_space<vmem>>, %arg4: memref<1x1x256xi32, #tpu.memory_space<vmem>>, %arg5: memref<1x1x8x128xf32, #tpu.memory_space<vmem>>) attributes {dimension_semantics = [#tpu.dimension_semantics<parallel>, #tpu.dimension_semantics<parallel>], iteration_bounds = array<i64: 2, 1>, scalar_prefetch = 0 : i64, scratch_operands = 0 : i64, tpu.core_type = #tpu.core_type<tc>, window_params = [{transform_indices = @transform_0, window_bounds = array<i64: 1, 4, 256>}, {transform_indices = @transform_1, window_bounds = array<i64: 1, 4, 256>}, {transform_indices = @transform_2, window_bounds = array<i64: 1, 1, 256>}, {transform_indices = @transform_3, window_bounds = array<i64: 1, 1, 8, 128>}]} {
    %c0 = arith.constant 0 : index
    %c0_0 = arith.constant 0 : index
    %c0_1 = arith.constant 0 : index
    %0 = vector.load %arg2[%c0, %c0_0, %c0_1] : memref<1x4x256xf32, #tpu.memory_space<vmem>>, vector<1x4x256xf32>
    %1 = vector.shape_cast %0 : vector<1x4x256xf32> to vector<4x256xf32>
    %c0_2 = arith.constant 0 : index
    %c0_3 = arith.constant 0 : index
    %c0_4 = arith.constant 0 : index
    %2 = vector.load %arg3[%c0_2, %c0_3, %c0_4] : memref<1x4x256xf32, #tpu.memory_space<vmem>>, vector<1x4x256xf32>
    %3 = vector.shape_cast %2 : vector<1x4x256xf32> to vector<4x256xf32>
    %c0_5 = arith.constant 0 : index
    %c0_6 = arith.constant 0 : index
    %c0_7 = arith.constant 0 : index
    %4 = vector.load %arg4[%c0_5, %c0_6, %c0_7] : memref<1x1x256xi32, #tpu.memory_space<vmem>>, vector<1x1x256xi32>
    %5 = vector.shape_cast %4 : vector<1x1x256xi32> to vector<1x256xi32>
    %c255_i32 = arith.constant 255 : i32
    %6 = vector.broadcast %c255_i32 : i32 to vector<1x256xi32>
    %7 = arith.cmpi eq, %5, %6 : vector<1x256xi32>
    %8 = vector.shape_cast %7 : vector<1x256xi1> to vector<1x256xi1>
    %9 = vector.broadcast %8 : vector<1x256xi1> to vector<4x256xi1>
    %cst = arith.constant 0.000000e+00 : f32
    %10 = vector.broadcast %cst : f32 to vector<4x256xf32>
    %11 = arith.select %9, %10, %1 : vector<4x256xi1>, vector<4x256xf32>
    %c0_i32 = arith.constant 0 : i32
    %12 = vector.broadcast %c0_i32 : i32 to vector<1x256xi32>
    %13 = arith.select %7, %12, %5 : vector<1x256xi1>, vector<1x256xi32>
    %14 = arith.addf %11, %3 : vector<4x256xf32>
    %cst_8 = arith.constant 2.000000e+00 : f32
    %15 = vector.broadcast %cst_8 : f32 to vector<4x256xf32>
    %16 = arith.mulf %14, %15 : vector<4x256xf32>
    %cst_9 = arith.constant dense<0xFF800000> : vector<256xf32>
    %17 = vector.multi_reduction <maximumf>, %16, %cst_9 [0] : vector<4x256xf32> to vector<256xf32>
    %18 = vector.shape_cast %17 : vector<256xf32> to vector<1x256xf32>
    %19 = vector.broadcast %18 : vector<1x256xf32> to vector<4x256xf32>
    %20 = arith.subf %16, %19 : vector<4x256xf32>
    %21 = math.exp %20 : vector<4x256xf32>
    %cst_10 = arith.constant dense<0.000000e+00> : vector<256xf32>
    %22 = vector.multi_reduction <add>, %21, %cst_10 [0] : vector<4x256xf32> to vector<256xf32>
    %23 = vector.shape_cast %22 : vector<256xf32> to vector<1x256xf32>
    %24 = vector.broadcast %23 : vector<1x256xf32> to vector<4x256xf32>
    %25 = arith.divf %21, %24 : vector<4x256xf32>
    %cst_11 = arith.constant 2.000000e+00 : f32
    %26 = vector.broadcast %cst_11 : f32 to vector<4x256xf32>
    %27 = arith.mulf %26, %25 : vector<4x256xf32>
    %28 = arith.mulf %27, %25 : vector<4x256xf32>
    %cst_12 = arith.constant 9.99999997E-7 : f32
    %29 = vector.broadcast %cst_12 : f32 to vector<4x256xf32>
    %30 = arith.addf %28, %29 : vector<4x256xf32>
    %31 = math.sqrt %30 : vector<4x256xf32>
    %32 = tpu.iota {dimensions = array<i32: 0>} : vector<4x256xi32>
    %33 = vector.shape_cast %13 : vector<1x256xi32> to vector<1x256xi32>
    %34 = vector.broadcast %33 : vector<1x256xi32> to vector<4x256xi32>
    %35 = arith.cmpi eq, %32, %34 : vector<4x256xi32>
    %cst_13 = arith.constant 0.000000e+00 : f32
    %36 = vector.broadcast %cst_13 : f32 to vector<4x256xf32>
    %37 = arith.select %35, %31, %36 : vector<4x256xi1>, vector<4x256xf32>
    %cst_14 = arith.constant dense<0xFF800000> : vector<4xf32>
    %38 = vector.multi_reduction <maximumf>, %25, %cst_14 [1] : vector<4x256xf32> to vector<4xf32>
    %39 = vector.shape_cast %38 : vector<4xf32> to vector<4x1xf32>
    %cst_15 = arith.constant dense<0xFF800000> : vector<1xf32>
    %40 = vector.multi_reduction <maximumf>, %39, %cst_15 [0] : vector<4x1xf32> to vector<1xf32>
    %41 = vector.shape_cast %40 : vector<1xf32> to vector<1x1xf32>
    %cst_16 = arith.constant dense<0.000000e+00> : vector<4xf32>
    %42 = vector.multi_reduction <add>, %37, %cst_16 [1] : vector<4x256xf32> to vector<4xf32>
    %43 = vector.shape_cast %42 : vector<4xf32> to vector<4x1xf32>
    %cst_17 = arith.constant dense<0.000000e+00> : vector<1xf32>
    %44 = vector.multi_reduction <add>, %43, %cst_17 [0] : vector<4x1xf32> to vector<1xf32>
    %45 = vector.shape_cast %44 : vector<1xf32> to vector<1x1xf32>
    %cst_18 = arith.constant dense<0.000000e+00> : vector<4xf32>
    %46 = vector.multi_reduction <add>, %31, %cst_18 [1] : vector<4x256xf32> to vector<4xf32>
    %47 = vector.shape_cast %46 : vector<4xf32> to vector<4x1xf32>
    %cst_19 = arith.constant dense<0.000000e+00> : vector<1xf32>
    %48 = vector.multi_reduction <add>, %47, %cst_19 [0] : vector<4x1xf32> to vector<1xf32>
    %49 = vector.shape_cast %48 : vector<1xf32> to vector<1x1xf32>
    %50 = tpu.iota {dimensions = array<i32: 0>} : vector<8x128xi32>
    %c0_i32_20 = arith.constant 0 : i32
    %51 = vector.broadcast %c0_i32_20 : i32 to vector<8x128xi32>
    %52 = arith.cmpi eq, %50, %51 : vector<8x128xi32>
    %c1_i32 = arith.constant 1 : i32
    %53 = vector.broadcast %c1_i32 : i32 to vector<8x128xi32>
    %54 = arith.cmpi eq, %50, %53 : vector<8x128xi32>
    %c2_i32 = arith.constant 2 : i32
    %55 = vector.broadcast %c2_i32 : i32 to vector<8x128xi32>
    %56 = arith.cmpi eq, %50, %55 : vector<8x128xi32>
    %cst_21 = arith.constant 0.000000e+00 : f32
    %57 = vector.shape_cast %49 : vector<1x1xf32> to vector<1x1xf32>
    %58 = vector.broadcast %57 : vector<1x1xf32> to vector<8x128xf32>
    %59 = vector.broadcast %cst_21 : f32 to vector<8x128xf32>
    %60 = arith.select %56, %58, %59 : vector<8x128xi1>, vector<8x128xf32>
    %61 = vector.shape_cast %45 : vector<1x1xf32> to vector<1x1xf32>
    %62 = vector.broadcast %61 : vector<1x1xf32> to vector<8x128xf32>
    %63 = arith.select %54, %62, %60 : vector<8x128xi1>, vector<8x128xf32>
    %64 = vector.shape_cast %41 : vector<1x1xf32> to vector<1x1xf32>
    %65 = vector.broadcast %64 : vector<1x1xf32> to vector<8x128xf32>
    %66 = arith.select %52, %65, %63 : vector<8x128xi1>, vector<8x128xf32>
    %c0_22 = arith.constant 0 : index
    %c0_23 = arith.constant 0 : index
    %c0_24 = arith.constant 0 : index
    %c0_25 = arith.constant 0 : index
    %67 = vector.load %arg5[%c0_22, %c0_23, %c0_24, %c0_25] : memref<1x1x8x128xf32, #tpu.memory_space<vmem>>, vector<1x1x8x128xf32>
    %68 = vector.shape_cast %67 : vector<1x1x8x128xf32> to vector<8x128xf32>
    %69 = vector.shape_cast %66 : vector<8x128xf32> to vector<1x1x8x128xf32>
    tpu.vector_store %arg5[%c0_22, %c0_23, %c0_24, %c0_25], %69 {strides = array<i32>} : memref<1x1x8x128xf32, #tpu.memory_space<vmem>>, vector<1x1x8x128xf32>,
    return
  }
  func.func @transform_0(%arg0: i32, %arg1: i32) -> (i32, i32, i32) {
    %c0_i32 = arith.constant 0 : i32
    %c0_i32_0 = arith.constant 0 : i32
    return %arg0, %c0_i32, %arg1 : i32, i32, i32
  }
  func.func @transform_1(%arg0: i32, %arg1: i32) -> (i32, i32, i32) {
    %c0_i32 = arith.constant 0 : i32
    %c0_i32_0 = arith.constant 0 : i32
    return %arg0, %c0_i32, %arg1 : i32, i32, i32
  }
  func.func @transform_2(%arg0: i32, %arg1: i32) -> (i32, i32, i32) {
    %c0_i32 = arith.constant 0 : i32
    %c0_i32_0 = arith.constant 0 : i32
    return %arg0, %c0_i32, %arg1 : i32, i32, i32
  }
  func.func @transform_3(%arg0: i32, %arg1: i32) -> (i32, i32, i32, i32) {
    %c0_i32 = arith.constant 0 : i32
    %c0_i32_0 = arith.constant 0 : i32
    %c0_i32_1 = arith.constant 0 : i32
    return %arg0, %arg1, %c0_i32, %c0_i32_0 : i32, i32, i32, i32
  }
}

</mosaic_0001>

<bundles_post_ra>
// kernel: dual_task_loss.1
= control target key start
LH: loop header
LB: loop body
LE: loop exit
PB: predicated region body
PF: predicated region fallthrough
CT: control target
= control target key end

     0   :  { %s655_s12 = smov 0   ;;  %s657_s13 = smov 0   ;;  %s716_s0 = inlined_call_operand.vmem [shape: f32[2,4,256], index: 0, kind: input, shape index: {}]   ;;  %s717_s1 = inlined_call_operand.vmem [shape: f32[2,4,256], index: 1, kind: input, shape index: {}]   ;;  %s718_s2 = inlined_call_operand.vmem [shape: s32[2,1,256], index: 2, kind: input, shape index: {}]   ;;  %s719_s3 = inlined_call_operand.vmem [shape: f32[2,1,8,128], index: 3, kind: output, shape index: {}]  }
   0x1   :  { %s659_s14 = smov 0  }
   0x2 LB: > { %s25_s15 = sadd.s32 1, %s628_s13  ;;  %p562_p0 = scmp.ge.s32.totalorder %s632_s14, 1  ;;  %s632_s14 = sphi %s659_s14, %s13_s14   ;;  %s628_s13 = sphi %s657_s13, %s721_s13   ;;  %s624_s12 = sphi %s655_s12, %s720_s12  }
   0x3   : > { %p27_p1 = scmp.ge.s32.totalorder %s25_s15, 2  ;;  %p191_p2 = scmp.lt.s32.totalorder %s632_s14, 3 }
   0x5   : > { %s723_s15 = smov (%p27_p1, %s25_s15), 0  ;;  %p192_p3 = pnand %p562_p0, %p191_p2 }
   0x6   : > { %p239_p4 = scmp.lt.s32.totalorder (!%p192_p3), %s624_s12, 1 }
   0x7   : > { %195 = sbr.rel (%p192_p3) target bundleno = 263 (0x107), region = 32 }
   0xc   : > { %s725_s12 = smov (!%p239_p4, %s624_s12), 1  ;;  %v634_v3 = vmov 0   ;;  %vm302_vm3 = vcmask 1043456  }
   0xd   : > { %s673_s16 = sshll.u32 %s725_s12, 3  ;;  %s567_s17 = sshll.u32 %s725_s12, 1 }
   0xe   : > { %s246_s20 = scalar_lea.vmem %s716_s0, %s673_s16  ;;  %s265_s23 = scalar_lea.vmem %s718_s2, %s567_s17 }
   0xf   : > { %v274_v0 = vld [vmem:[%s246_s20] sm:$0xff]  ;;  %s256_s26 = scalar_lea.vmem %s717_s1, %s673_s16  ;;  %s273_s29 = scalar_lea.vmem %s719_s3, %s673_s16 }
  0x10   : > { %v276_v1 = vld [vmem:[%s265_s23] sm:$0x3]  ;;  %284 = vst [vmem:[#allocation1] ss:$2 sm:$0xff] %v274_v0 }
  0x11   : > { %vm277_vm0 = vcmp.eq.s32.totalorder %v276_v1, 255  ;;  %v275_v5 = vld [vmem:[%s256_s26] sm:$0xff] }
  0x12   : > { %v686_v2 = vsel %vm277_vm0, 0, %v276_v1  ;;  %v278_v4 = vsel %vm277_vm0, 1, %v634_v3 }
  0x13   : > { %v279_v6 = vperm.slane %v278_v4, 0  ;;  %v280_v7 = vperm.slane %v278_v4, 1 }
  0x15   : > { %vm281_vm1 = vcmp.eq.s32.totalorder %v279_v6, 1  ;;  %vm282_vm2 = vcmp.eq.s32.totalorder %v280_v7, 1 }
  0x17   : > { %v285_v8 = vld.sshfl [vmem:[#allocation1] sm:$0xff pattern:$0x75316420]  ;;  %v286_v9 = vld.sshfl [vmem:[#allocation1 + $0x8] sm:$0xff pattern:$0x75316420] }
  0x18   : > { %293 = vst [vmem:[#allocation1] ss:$2 sm:$0xff] %v275_v5  ;;  %v289_v10 = vsel %vm281_vm1, 0.0, %v285_v8  ;;  %v290_v11 = vsel %vm282_vm2, 0.0, %v286_v9 }
  0x1f   : > { %v294_v12 = vld.sshfl [vmem:[#allocation1] sm:$0xff pattern:$0x75316420]  ;;  %v295_v13 = vld.sshfl [vmem:[#allocation1 + $0x8] sm:$0xff pattern:$0x75316420] }
  0x20   : > { %v298_v14 = vadd.f32 %v294_v12, %v289_v10  ;;  %v299_v15 = vadd.f32 %v295_v13, %v290_v11 }
  0x22   : > { %v300_v16 = vmul.f32 2.0, %v298_v14  ;;  %v301_v17 = vmul.f32 2.0, %v299_v15 }
  0x24   : > { %v303_v18 = vsel %vm302_vm3, %v300_v16, -inf  ;;  %v310_v19 = vsel %vm302_vm3, %v301_v17, -inf }
  0x25   : > { %v304_v20 = vrot.slane %v303_v18, 4  ;;  %v311_v21 = vrot.slane %v310_v19, 4 }
  0x27   : > { %v305_v22 = vmax.f32 %v303_v18, %v304_v20  ;;  %v312_v23 = vmax.f32 %v310_v19, %v311_v21 }
  0x29   : > { %v306_v24 = vrot.slane %v305_v22, 2  ;;  %v313_v25 = vrot.slane %v312_v23, 2 }
  0x2b   : > { %v307_v26 = vmax.f32 %v305_v22, %v306_v24  ;;  %v314_v27 = vmax.f32 %v312_v23, %v313_v25 }
  0x2d   : > { %v308_v28 = vrot.slane %v307_v26, 1  ;;  %v315_v29 = vrot.slane %v314_v27, 1 }
  0x2f   : > { %v309_v30 = vmax.f32 %v307_v26, %v308_v28  ;;  %v316_v31 = vmax.f32 %v314_v27, %v315_v29  ;;  %v397_v28 = vlaneseq }
  0x31   : > { %v317_v32 = vsub.f32 %v300_v16, %v309_v30  ;;  %v318_v33 = vsub.f32 %v301_v17, %v316_v31 }
  0x33   : > { %v319_v34 = vmul.f32 1.442695, %v317_v32  ;;  %v321_v35 = vmul.f32 1.442695, %v318_v33  ;;  %v399_v32 = vperm.slane %v686_v2, 0  ;;  %v400_v33 = vperm.slane %v686_v2, 1 }
  0x35   : > { %598 = vpow2.f32 %v319_v34 }
  0x36   : > { %600 = vpow2.f32 %v321_v35 }
  0x3b   : > { %v599_v36 = vpop.eup %598 }
  0x3c   : > { %v601_v37 = vpop.eup %600  ;;  %v323_v38 = vsel %vm302_vm3, %v599_v36, 0.0 }
  0x3d   : > { %v324_v39 = vrot.slane %v323_v38, 4  ;;  %v330_v40 = vsel %vm302_vm3, %v601_v37, 0.0 }
  0x3e   : > { %v331_v41 = vrot.slane %v330_v40, 4 }
  0x3f   : > { %v325_v42 = vadd.f32 %v324_v39, %v323_v38 }
  0x40   : > { %v332_v43 = vadd.f32 %v331_v41, %v330_v40 }
  0x41   : > { %v326_v44 = vrot.slane %v325_v42, 2 }
  0x42   : > { %v333_v45 = vrot.slane %v332_v43, 2 }
  0x43   : > { %v327_v46 = vadd.f32 %v326_v44, %v325_v42 }
  0x44   : > { %v334_v47 = vadd.f32 %v333_v45, %v332_v43 }
  0x45   : > { %v328_v48 = vrot.slane %v327_v46, 1 }
  0x46   : > { %v335_v49 = vrot.slane %v334_v47, 1 }
  0x47   : > { %v329_v50 = vadd.f32 %v328_v48, %v327_v46 }
  0x48   : > { %v336_v51 = vadd.f32 %v335_v49, %v334_v47 }
  0x49   : > { %602 = vrcp.f32 %v329_v50  ;;  %vm342_vm4 = vweird.f32 %v329_v50  ;;  %v348_v55 = vand.u32 2147483648, %v329_v50  ;;  %v346_v58 = vand.u32 2147483647, %v329_v50 }
  0x4a   : > { %604 = vrcp.f32 %v336_v51  ;;  %v363_v59 = vand.u32 2147483648, %v336_v51  ;;  %vm357_vm6 = vweird.f32 %v336_v51  ;;  %v361_v61 = vand.u32 2147483647, %v336_v51 }
  0x4b   : > { %v349_v63 = vor.u32 1.1754944e-38, %v348_v55  ;;  %vm347_vm9 = vcmp.eq.f32.partialorder %v346_v58, 8.507059e+37 }
  0x4c   : > { %v364_v3 = vor.u32 1.1754944e-38, %v363_v59  ;;  %vm362_vm11 = vcmp.eq.f32.partialorder %v361_v61, 8.507059e+37 }
  0x4f   : > { %v603_v52 = vpop.eup %602 }
  0x50   : > { %v605_v53 = vpop.eup %604  ;;  %v338_v54 = vmul.f32 %v603_v52, %v329_v50  ;;  %vm343_vm5 = vweird.f32 %v603_v52 }
  0x51   : > { %v353_v56 = vmul.f32 %v605_v53, %v336_v51  ;;  %vm358_vm7 = vweird.f32 %v605_v53  ;;  %vm344_vm8 = vmor %vm342_vm4, %vm343_vm5 }
  0x52   : > { %v339_v57 = vsub.f32 1.0, %v338_v54  ;;  %vm359_vm10 = vmor %vm357_vm6, %vm358_vm7 }
  0x53   : > { %v354_v60 = vsub.f32 1.0, %v353_v56 }
  0x54   : > { %v340_v62 = vmul.f32 %v603_v52, %v339_v57 }
  0x55   : > { %v355_v0 = vmul.f32 %v605_v53, %v354_v60 }
  0x56   : > { %v341_v1 = vadd.f32 %v603_v52, %v340_v62 }
  0x57   : > { %v356_v4 = vadd.f32 %v605_v53, %v355_v0 }
  0x58   : > { %v345_v5 = vsel %vm344_vm8, %v603_v52, %v341_v1 }
  0x59   : > { %v350_v6 = vsel %vm347_vm9, %v349_v63, %v345_v5  ;;  %v360_v7 = vsel %vm359_vm10, %v605_v53, %v356_v4 }
  0x5a   : > { %v351_v8 = vmul.f32 %v599_v36, %v350_v6  ;;  %v365_v9 = vsel %vm362_vm11, %v364_v3, %v360_v7  ;;  %v398_v36 = vshrl.u32 %v397_v28, 7 }
  0x5b   : > { %v366_v10 = vmul.f32 %v601_v37, %v365_v9 }
  0x5c   : > { %v367_v11 = vmul.f32 2.0, %v351_v8  ;;  %v405_v12 = vsel %vm302_vm3, %v351_v8, -inf  ;;  %vm401_vm0 = vcmp.eq.s32.totalorder %v398_v36, %v399_v32  ;;  %vm402_vm1 = vcmp.eq.s32.totalorder %v398_v36, %v400_v33 }
  0x5d   : > { %v368_v13 = vmul.f32 2.0, %v366_v10  ;;  %v406_v14 = vsel %vm302_vm3, %v366_v10, -inf  ;;  %vm443_vm2 = vcmp.eq.s32.totalorder %v398_v36, 2  ;;  %vm442_vm4 = vcmp.eq.s32.totalorder %v398_v36, 1 }
  0x5e   : > { %v369_v15 = vmul.f32 %v367_v11, %v351_v8  ;;  %v407_v16 = vmax.f32 %v405_v12, %v406_v14  ;;  %vm441_vm5 = vcmp.eq.s32.totalorder %v398_v36, 0 }
  0x5f   : > { %v370_v17 = vmul.f32 %v368_v13, %v366_v10 }
  0x60   : > { %v371_v18 = vadd.f32 1e-06, %v369_v15  ;;  %408 = vmax.xlane.f32.xlu1 %v407_v16 }
  0x61   : > { %v372_v19 = vadd.f32 1e-06, %v370_v17 }
  0x62   : > { %606 = vrsqrt.f32 %v371_v18  ;;  %vm380_vm12 = vcmp.eq.f32.partialorder %v371_v18, inf  ;;  %v383_v34 = vand.u32 2147483648, %v371_v18  ;;  %vm382_vm13 = vcmp.eq.f32.partialorder %v371_v18, 0.0 }
  0x63   : > { %608 = vrsqrt.f32 %v372_v19  ;;  %vm392_vm14 = vcmp.eq.f32.partialorder %v372_v19, inf  ;;  %v395_v38 = vand.u32 2147483648, %v372_v19  ;;  %vm394_vm15 = vcmp.eq.f32.partialorder %v372_v19, 0.0 }
  0x68   : > { %v607_v20 = vpop.eup %606 }
  0x69   : > { %v609_v21 = vpop.eup %608  ;;  %v374_v22 = vmul.f32 %v607_v20, %v371_v18 }
  0x6a   : > { %v386_v23 = vmul.f32 %v609_v21, %v372_v19 }
  0x6b   : > { %v375_v24 = vmul.f32 %v607_v20, %v374_v22 }
  0x6c   : > { %v387_v25 = vmul.f32 %v609_v21, %v386_v23 }
  0x6d   : > { %v376_v26 = vmul.f32 0.5, %v375_v24 }
  0x6e   : > { %v388_v27 = vmul.f32 0.5, %v387_v25 }
  0x6f   : > { %v377_v29 = vsub.f32 1.5, %v376_v26 }
  0x70   : > { %v389_v30 = vsub.f32 1.5, %v388_v27 }
  0x71   : > { %v378_v31 = vmul.f32 %v607_v20, %v377_v29 }
  0x72   : > { %v390_v35 = vmul.f32 %v609_v21, %v389_v30 }
  0x73   : > { %v379_v37 = vmul.f32 %v378_v31, %v371_v18 }
  0x74   : > { %v391_v39 = vmul.f32 %v390_v35, %v372_v19 }
  0x75   : > { %v381_v40 = vsel %vm380_vm12, %v371_v18, %v379_v37 }
  0x76   : > { %v384_v41 = vsel %vm382_vm13, %v383_v34, %v381_v40  ;;  %v393_v42 = vsel %vm392_vm14, %v372_v19, %v391_v39 }
  0x77   : > { %v396_v43 = vsel %vm394_vm15, %v395_v38, %v393_v42  ;;  %v429_v44 = vsel %vm302_vm3, %v384_v41, 0.0  ;;  %v403_v47 = vsel %vm401_vm0, %v384_v41, 0.0 }
  0x78   : > { %v430_v2 = vsel %vm302_vm3, %v396_v43, 0.0  ;;  %v404_v45 = vsel %vm402_vm1, %v396_v43, 0.0  ;;  %v417_v48 = vsel %vm302_vm3, %v403_v47, 0.0 }
  0x79   : > { %v431_v46 = vadd.f32 %v430_v2, %v429_v44  ;;  %v418_v49 = vsel %vm302_vm3, %v404_v45, 0.0 }
  0x7a   : > { %v419_v50 = vadd.f32 %v418_v49, %v417_v48 }
  0x7b   : > { %432 = vadd.xlane.f32.xlu0 %v431_v46 }
  0x83   : > { %420 = vadd.xlane.f32.xlu0 %v419_v50 }
  0xd3   : > { %v409_v51 = vpop.xlane.xlu1 %408 }
  0xd4   : > { %v410_v52 = vsel %vm302_vm3, %v409_v51, -inf }
  0xd5   : > { %v411_v55 = vrot.slane %v410_v52, 4 }
  0xd7   : > { %v412_v58 = vmax.f32 %v410_v52, %v411_v55 }
  0xd9   : > { %v413_v62 = vrot.slane %v412_v58, 2 }
  0xdb   : > { %v414_v4 = vmax.f32 %v412_v58, %v413_v62 }
  0xdd   : > { %v415_v8 = vrot.slane %v414_v4, 1 }
  0xdf   : > { %v416_v12 = vmax.f32 %v414_v4, %v415_v8 }
  0xee   : > { %v433_v53 = vpop.xlane.xlu0 %432 }
  0xef   : > { %v434_v54 = vsel %vm302_vm3, %v433_v53, 0.0 }
  0xf0   : > { %v435_v56 = vrot.slane %v434_v54, 4 }
  0xf2   : > { %v436_v57 = vadd.f32 %v435_v56, %v434_v54 }
  0xf4   : > { %v437_v59 = vrot.slane %v436_v57, 2 }
  0xf6   : > { %v421_v60 = vpop.xlane.xlu0 %420  ;;  %v438_v61 = vadd.f32 %v437_v59, %v436_v57 }
  0xf7   : > { %v422_v63 = vsel %vm302_vm3, %v421_v60, 0.0 }
  0xf8   : > { %v423_v0 = vrot.slane %v422_v63, 4  ;;  %v439_v3 = vrot.slane %v438_v61, 1 }
  0xfa   : > { %v424_v1 = vadd.f32 %v423_v0, %v422_v63  ;;  %v440_v7 = vadd.f32 %v439_v3, %v438_v61 }
  0xfc   : > { %v425_v5 = vrot.slane %v424_v1, 2  ;;  %v444_v11 = vsel %vm443_vm2, %v440_v7, 0.0 }
  0xfe   : > { %v426_v6 = vadd.f32 %v425_v5, %v424_v1 }
 0x100   : > { %v427_v9 = vrot.slane %v426_v6, 1 }
 0x102   : > { %v428_v10 = vadd.f32 %v427_v9, %v426_v6 }
 0x104   : > { %v445_v13 = vsel %vm442_vm4, %v428_v10, %v444_v11 }
 0x105   : > { %v446_v14 = vsel %vm441_vm5, %v416_v12, %v445_v13 }
 0x106   : > { %447 = vst [vmem:[%s273_s29] sm:$0xff] %v446_v14 }
 0x107 PF: > { %s13_s14 = sadd.s32 1, %s632_s14   ;;  %s720_s12 = smov %s628_s13 }
 0x108   : > { %p10_p5 = scmp.ge.s32.totalorder %s13_s14, 4   ;;  %s721_s13 = smov %s723_s15 }
 0x10a   :  { %12 = sbr.rel (!%p10_p5) target bundleno = 2 (0x2), region = 68 }

</bundles_post_ra>
